<compile_context>
chip_gen: v7x
topology: tpu7x:2x2x1
jax: 0.10.0
libtpu: 0.0.40
codegen_flags: <defaults>
</compile_context>

<pallas_src>
import jax
import jax.numpy as jnp
from jax import lax
from jax.experimental import pallas as pl
from jax.experimental.pallas import tpu as pltpu


def _lrelu(v):
    # nn.LeakyReLU(0.2); for 0 < slope < 1, max(v, slope*v) == leaky_relu(v).
    return jnp.maximum(v, 0.2 * v)


def _gcn_kernel(x_ref, adjT_ref, wadj_ref, wswT_ref, bsw_ref, wdwT_ref, bdw_ref, out_ref):
    TB, N, F_in = x_ref.shape
    F_pad = out_ref.shape[-1]
    R = TB * N

    xb = x_ref[...]          # (TB, N, F_in)  node-major, features on lanes
    adjT = adjT_ref[...]     # (TB, N, N)     dynamic_adj transposed by the wrapper
    wadj = wadj_ref[...]     # (N, N)         static_adj Conv1d weight (no bias)
    wswT = wswT_ref[...]     # (F_in, F_in)   static_weight Conv1d weight, pre-transposed
    bsw = bsw_ref[...]       # (1, F_in)
    wdwT = wdwT_ref[...]     # (F_in, F_pad)  dynamic_weight weight, pre-transposed + lane-padded
    bdw = bdw_ref[...]       # (1, F_pad)

    # [b,n,m] x [b,m,f] -> [b,n,f]
    bmm = (((2,), (1,)), ((0,), (0,)))

    # ---- static branch --------------------------------------------------------
    # static_adj (shared weight, per-batch node contraction), batched dot_general:
    #   a[b,n,f] = LeakyReLU( sum_m Wadj[n,m] * x[b,m,f] )
    wadj_b = jnp.broadcast_to(wadj, (TB, N, N))
    a = _lrelu(lax.dot_general(wadj_b, xb, bmm, preferred_element_type=jnp.float32))

    # static_weight folded over all TB*N rows (lane-dense, no transposes):
    #   out_static[b,n,o] = LeakyReLU( sum_f Wsw[o,f] * a[b,n,f] + bsw[o] )
    a2 = a.reshape(R, F_in)
    out_static = _lrelu(jnp.dot(a2, wswT, preferred_element_type=jnp.float32) + bsw)

    # ---- residual (requires out_features == in_features) -----------------------
    x1 = xb + out_static.reshape(TB, N, F_in)                    # (TB, N, F)

    # ---- dynamic branch ---------------------------------------------------------
    # adjT[b,n,m] == dynamic_adj[b,m,n], so colsum over axis 1 == rowsums of adj and
    # the normalized-adjacency contraction is a straight batched matmul; the 0.8*I
    # term is folded as `+ 0.8 * x1` instead of building an identity matrix.
    colsum = jnp.sum(adjT, axis=1, keepdims=True)                # (TB, 1, N)
    adj_nT = adjT * (0.5 / (colsum + 1e-6))                      # (TB, N, N)
    y = _lrelu(lax.dot_general(adj_nT, x1, bmm, preferred_element_type=jnp.float32)
               + 0.8 * x1)                                       # (TB, N, F)

    # dynamic_weight folded over TB*N rows; output lanes padded to F_pad (mult of 128)
    y2 = y.reshape(R, F_in)
    z = _lrelu(jnp.dot(y2, wdwT, preferred_element_type=jnp.float32) + bdw)  # (R, F_pad)

    out_ref[...] = z.reshape(TB, N, F_pad).astype(out_ref.dtype)


def _round_up(v, m):
    return (v + m - 1) // m * m


def _vmem_budget_bytes():
    """~75% of physical VMEM: 96 MiB on v5e/v6e (128 MiB), 48 MiB on v7x (64 MiB)."""
    cap = 64 << 20
    try:
        cap = int(getattr(pltpu.get_tpu_info(), "vmem_capacity_bytes", cap))
    except Exception:
        pass
    return max(32 << 20, (cap * 3) // 4)


def _pick_tb(B, N, F_in, F_pad, budget_bytes):
    """Largest divisor of B whose per-step working set fits the VMEM budget, capped at
    B//2 so the grid has length >= 2 (both v7x TensorCores get work)."""
    dt = 4
    # weight specs (double-buffered by the pipeline; they are small for typical GCNs)
    weights = 2 * dt * (N * N + F_in * F_in + F_in + F_in * F_pad + F_pad)
    per_b_blocks = 2 * dt * N * (F_in + N + F_pad)      # double-buffered x / adjT / out blocks
    per_b_live = dt * N * (6 * F_in + 2 * N + F_pad)    # in-kernel intermediates (a, s, x1, y, z, adj_nT)
    per_b = per_b_blocks + per_b_live
    cap = max(1, int((budget_bytes - weights) // max(per_b, 1)))
    max_tb = B if B < 2 else max(1, B // 2)             # keep grid >= 2 when B >= 2
    max_tb = min(max_tb, cap)
    tb = 1
    for d in range(1, max_tb + 1):
        if B % d == 0:
            tb = d
    return tb


def graph_convolution(x, dynamic_adj, params):
    B, N, F_in = x.shape
    wadj = jnp.asarray(params["wadj"])               # (N, N)
    wsw = jnp.asarray(params["wsw"])                 # (F_out, F_in)
    F_out = wsw.shape[0]
    assert F_out == F_in, (
        "GraphConvolution residual `x = x + out_static` requires out_features == in_features")
    assert dynamic_adj.shape == (B, N, N)

    # Lane-pad the dynamic (final) projection so stores are unmasked full-width vst's.
    F_pad = _round_up(F_out, 128)

    # Wrapper-side layout plumbing (pure layout, no compute hoisted out of the kernel).
    wswT = jnp.transpose(wsw)                        # (F_in, F_out==F_in)
    bsw = jnp.asarray(params["bsw"]).reshape(1, F_out)
    wdwT = jnp.transpose(jnp.asarray(params["wdw"]))  # (F_in, F_out)
    bdw = jnp.asarray(params["bdw"]).reshape(1, F_out)
    if F_pad != F_out:
        wdwT = jnp.pad(wdwT, ((0, 0), (0, F_pad - F_out)))
        bdw = jnp.pad(bdw, ((0, 0), (0, F_pad - F_out)))
    adj_T = jnp.transpose(dynamic_adj, (0, 2, 1))    # so the kernel needs no transposes

    budget = _vmem_budget_bytes()
    TB = _pick_tb(B, N, F_in, F_pad, budget)
    grid = (B // TB,)

    def whole(arr):
        return pl.BlockSpec(arr.shape, lambda g: (0,) * arr.ndim)

    flops = 4 * B * N * N * F_in + 2 * B * N * F_in * (F_in + F_pad)
    bytes_accessed = 4 * (B * N * F_in + B * N * N + B * N * F_pad
                          + N * N + F_in * F_in + F_in * F_pad + F_in + F_pad)

    out_padded = pl.pallas_call(
        _gcn_kernel,
        out_shape=jax.ShapeDtypeStruct((B, N, F_pad), x.dtype),
        grid_spec=pltpu.PrefetchScalarGridSpec(
            num_scalar_prefetch=0,
            grid=grid,
            in_specs=[
                pl.BlockSpec((TB, N, F_in), lambda g: (g, 0, 0)),   # x (node-major)
                pl.BlockSpec((TB, N, N), lambda g: (g, 0, 0)),      # dynamic_adj^T
                whole(wadj),
                whole(wswT),
                whole(bsw),
                whole(wdwT),
                whole(bdw),
            ],
            out_specs=pl.BlockSpec((TB, N, F_pad), lambda g: (g, 0, 0)),  # lane-dense stores
        ),
        compiler_params=pltpu.CompilerParams(
            dimension_semantics=("parallel",),   # independent batch steps -> both TCs on v7x
            vmem_limit_bytes=int(budget),
        ),
        cost_estimate=pl.CostEstimate(
            flops=flops,
            transcendentals=B * N,
            bytes_accessed=bytes_accessed,
        ),
    )(x, adj_T, wadj, wswT, bsw, wdwT, bdw)

    # Drop the lane padding and go back to the PyTorch NCL layout (one XLA transpose).
    out = out_padded[..., :F_out]                    # (B, N, F_out)
    return jnp.transpose(out, (0, 2, 1))             # (B, F_out, N)


def _reference(x, adj, params):
    """Pure-JAX reference mirroring the PyTorch forward."""
    lrelu = lambda v: jnp.where(v > 0, v, 0.2 * v)
    B, N, F_in = x.shape
    rowsum = adj.sum(axis=2, keepdims=True)
    adj_n = adj * 0.5 / (rowsum + 1e-6) + 0.8 * jnp.eye(N, dtype=adj.dtype)[None]
    a = lrelu(jnp.einsum("nm,bmf->bnf", params["wadj"], x))
    out_static = lrelu(jnp.einsum("of,bnf->bon", params["wsw"], a)
                       + params["bsw"][None, :, None])
    x1 = jnp.transpose(x, (0, 2, 1)) + out_static
    y = lrelu(jnp.einsum("bfm,bmn->bfn", x1, adj_n))
    z = lrelu(jnp.einsum("of,bfn->bon", params["wdw"], y) + params["bdw"][None, :, None])
    return z


if __name__ == "__main__":
    B, num_nodes, in_features = 2, 8, 32
    out_features = in_features  # required by the residual add in the original module

    key = jax.random.PRNGKey(0)
    k_x, k_adj, k_wadj, k_wsw, k_bsw, k_wdw, k_bdw = jax.random.split(key, 7)

    x = jax.random.normal(k_x, (B, num_nodes, in_features), dtype=jnp.float32)
    dynamic_adj = jax.random.uniform(k_adj, (B, num_nodes, num_nodes), dtype=jnp.float32)

    params = {
        "wadj": jax.random.normal(k_wadj, (num_nodes, num_nodes), jnp.float32) * 0.1,
        "wsw": jax.random.normal(k_wsw, (out_features, in_features), jnp.float32) * 0.1,
        "bsw": jax.random.normal(k_bsw, (out_features,), jnp.float32) * 0.1,
        "wdw": jax.random.normal(k_wdw, (out_features, in_features), jnp.float32) * 0.1,
        "bdw": jax.random.normal(k_bdw, (out_features,), jnp.float32) * 0.1,
    }

    out = jax.block_until_ready(graph_convolution(x, dynamic_adj, params))

    ref = _reference(x, dynamic_adj, params)
    assert out.shape == (B, out_features, num_nodes)
    assert jnp.allclose(out, ref, atol=1e-4, rtol=1e-4), "mismatch vs reference"

    print("KERNEL_OK")
</pallas_src>

<mosaic_0001>
module attributes {stable_mosaic.version = 11 : i64} {
  func.func @_gcn_kernel(%arg0: i32, %arg1: memref<1x8x32xf32, #tpu.memory_space<vmem>>, %arg2: memref<1x8x8xf32, #tpu.memory_space<vmem>>, %arg3: memref<8x8xf32, #tpu.memory_space<vmem>>, %arg4: memref<32x32xf32, #tpu.memory_space<vmem>>, %arg5: memref<1x32xf32, #tpu.memory_space<vmem>>, %arg6: memref<32x128xf32, #tpu.memory_space<vmem>>, %arg7: memref<1x128xf32, #tpu.memory_space<vmem>>, %arg8: memref<1x8x128xf32, #tpu.memory_space<vmem>>) attributes {dimension_semantics = [#tpu.dimension_semantics<parallel>], iteration_bounds = array<i64: 2>, scalar_prefetch = 0 : i64, scratch_operands = 0 : i64, tpu.core_type = #tpu.core_type<tc>, window_params = [{transform_indices = @transform_0, window_bounds = array<i64: 1, 8, 32>}, {transform_indices = @transform_1, window_bounds = array<i64: 1, 8, 8>}, {pipeline_mode = #tpu.pipeline_mode<synchronous>, transform_indices = @transform_2, window_bounds = array<i64: 8, 8>}, {pipeline_mode = #tpu.pipeline_mode<synchronous>, transform_indices = @transform_3, window_bounds = array<i64: 32, 32>}, {pipeline_mode = #tpu.pipeline_mode<synchronous>, transform_indices = @transform_4, window_bounds = array<i64: 1, 32>}, {pipeline_mode = #tpu.pipeline_mode<synchronous>, transform_indices = @transform_5, window_bounds = array<i64: 32, 128>}, {pipeline_mode = #tpu.pipeline_mode<synchronous>, transform_indices = @transform_6, window_bounds = array<i64: 1, 128>}, {transform_indices = @transform_7, window_bounds = array<i64: 1, 8, 128>}]} {
    %c0 = arith.constant 0 : index
    %c0_0 = arith.constant 0 : index
    %c0_1 = arith.constant 0 : index
    %0 = vector.load %arg1[%c0, %c0_0, %c0_1] : memref<1x8x32xf32, #tpu.memory_space<vmem>>, vector<1x8x32xf32>
    %c0_2 = arith.constant 0 : index
    %c0_3 = arith.constant 0 : index
    %c0_4 = arith.constant 0 : index
    %1 = vector.load %arg2[%c0_2, %c0_3, %c0_4] : memref<1x8x8xf32, #tpu.memory_space<vmem>>, vector<1x8x8xf32>
    %c0_5 = arith.constant 0 : index
    %c0_6 = arith.constant 0 : index
    %2 = vector.load %arg3[%c0_5, %c0_6] : memref<8x8xf32, #tpu.memory_space<vmem>>, vector<8x8xf32>
    %c0_7 = arith.constant 0 : index
    %c0_8 = arith.constant 0 : index
    %3 = vector.load %arg4[%c0_7, %c0_8] : memref<32x32xf32, #tpu.memory_space<vmem>>, vector<32x32xf32>
    %c0_9 = arith.constant 0 : index
    %c0_10 = arith.constant 0 : index
    %4 = vector.load %arg5[%c0_9, %c0_10] : memref<1x32xf32, #tpu.memory_space<vmem>>, vector<1x32xf32>
    %c0_11 = arith.constant 0 : index
    %c0_12 = arith.constant 0 : index
    %5 = vector.load %arg6[%c0_11, %c0_12] : memref<32x128xf32, #tpu.memory_space<vmem>>, vector<32x128xf32>
    %c0_13 = arith.constant 0 : index
    %c0_14 = arith.constant 0 : index
    %6 = vector.load %arg7[%c0_13, %c0_14] : memref<1x128xf32, #tpu.memory_space<vmem>>, vector<1x128xf32>
    %7 = vector.shape_cast %2 : vector<8x8xf32> to vector<1x8x8xf32>
    %cst = arith.constant dense<0.000000e+00> : vector<1x8x32xf32>
    %8 = tpu.matmul %7, %0, %cst {dimension_numbers = #tpu.dot_dimension_numbers<[2], [1], [1], [2], [0, 0, 0, 1, 1, 2], [0], [0]>} : vector<1x8x8xf32>, vector<1x8x32xf32>, vector<1x8x32xf32> -> vector<1x8x32xf32>
    %cst_15 = arith.constant 2.000000e-01 : f32
    %9 = vector.broadcast %cst_15 : f32 to vector<1x8x32xf32>
    %10 = arith.mulf %9, %8 : vector<1x8x32xf32>
    %11 = arith.maximumf %8, %10 : vector<1x8x32xf32>
    %12 = vector.shape_cast %11 : vector<1x8x32xf32> to vector<8x32xf32>
    %cst_16 = arith.constant dense<0.000000e+00> : vector<8x32xf32>
    %13 = tpu.matmul %12, %3, %cst_16 {dimension_numbers = #tpu.dot_dimension_numbers<[1], [0], [0], [1], [0, 0, 1, 1], [], []>} : vector<8x32xf32>, vector<32x32xf32>, vector<8x32xf32> -> vector<8x32xf32>
    %14 = vector.broadcast %4 : vector<1x32xf32> to vector<8x32xf32>
    %15 = arith.addf %13, %14 : vector<8x32xf32>
    %cst_17 = arith.constant 2.000000e-01 : f32
    %16 = vector.broadcast %cst_17 : f32 to vector<8x32xf32>
    %17 = arith.mulf %16, %15 : vector<8x32xf32>
    %18 = arith.maximumf %15, %17 : vector<8x32xf32>
    %19 = vector.shape_cast %18 : vector<8x32xf32> to vector<1x8x32xf32>
    %20 = arith.addf %0, %19 : vector<1x8x32xf32>
    %cst_18 = arith.constant dense<0.000000e+00> : vector<1x8xf32>
    %21 = vector.multi_reduction <add>, %1, %cst_18 [1] : vector<1x8x8xf32> to vector<1x8xf32>
    %22 = vector.shape_cast %21 : vector<1x8xf32> to vector<1x1x8xf32>
    %cst_19 = arith.constant 9.99999997E-7 : f32
    %23 = vector.broadcast %cst_19 : f32 to vector<1x1x8xf32>
    %24 = arith.addf %22, %23 : vector<1x1x8xf32>
    %cst_20 = arith.constant 5.000000e-01 : f32
    %25 = vector.broadcast %cst_20 : f32 to vector<1x1x8xf32>
    %26 = arith.divf %25, %24 : vector<1x1x8xf32>
    %27 = vector.broadcast %26 : vector<1x1x8xf32> to vector<1x8x8xf32>
    %28 = arith.mulf %1, %27 : vector<1x8x8xf32>
    %cst_21 = arith.constant dense<0.000000e+00> : vector<1x8x32xf32>
    %29 = tpu.matmul %28, %20, %cst_21 {dimension_numbers = #tpu.dot_dimension_numbers<[2], [1], [1], [2], [0, 0, 0, 1, 1, 2], [0], [0]>} : vector<1x8x8xf32>, vector<1x8x32xf32>, vector<1x8x32xf32> -> vector<1x8x32xf32>
    %cst_22 = arith.constant 8.000000e-01 : f32
    %30 = vector.broadcast %cst_22 : f32 to vector<1x8x32xf32>
    %31 = arith.mulf %30, %20 : vector<1x8x32xf32>
    %32 = arith.addf %29, %31 : vector<1x8x32xf32>
    %cst_23 = arith.constant 2.000000e-01 : f32
    %33 = vector.broadcast %cst_23 : f32 to vector<1x8x32xf32>
    %34 = arith.mulf %33, %32 : vector<1x8x32xf32>
    %35 = arith.maximumf %32, %34 : vector<1x8x32xf32>
    %36 = vector.shape_cast %35 : vector<1x8x32xf32> to vector<8x32xf32>
    %cst_24 = arith.constant dense<0.000000e+00> : vector<8x128xf32>
    %37 = tpu.matmul %36, %5, %cst_24 {dimension_numbers = #tpu.dot_dimension_numbers<[1], [0], [0], [1], [0, 0, 1, 1], [], []>} : vector<8x32xf32>, vector<32x128xf32>, vector<8x128xf32> -> vector<8x128xf32>
    %38 = vector.broadcast %6 : vector<1x128xf32> to vector<8x128xf32>
    %39 = arith.addf %37, %38 : vector<8x128xf32>
    %cst_25 = arith.constant 2.000000e-01 : f32
    %40 = vector.broadcast %cst_25 : f32 to vector<8x128xf32>
    %41 = arith.mulf %40, %39 : vector<8x128xf32>
    %42 = arith.maximumf %39, %41 : vector<8x128xf32>
    %43 = vector.shape_cast %42 : vector<8x128xf32> to vector<1x8x128xf32>
    %c0_26 = arith.constant 0 : index
    %c0_27 = arith.constant 0 : index
    %c0_28 = arith.constant 0 : index
    %44 = vector.load %arg8[%c0_26, %c0_27, %c0_28] : memref<1x8x128xf32, #tpu.memory_space<vmem>>, vector<1x8x128xf32>
    tpu.vector_store %arg8[%c0_26, %c0_27, %c0_28], %43 {strides = array<i32>} : memref<1x8x128xf32, #tpu.memory_space<vmem>>, vector<1x8x128xf32>,
    return
  }
  func.func @transform_0(%arg0: i32) -> (i32, i32, i32) {
    %c0_i32 = arith.constant 0 : i32
    %c0_i32_0 = arith.constant 0 : i32
    %c0_i32_1 = arith.constant 0 : i32
    return %arg0, %c0_i32, %c0_i32_0 : i32, i32, i32
  }
  func.func @transform_1(%arg0: i32) -> (i32, i32, i32) {
    %c0_i32 = arith.constant 0 : i32
    %c0_i32_0 = arith.constant 0 : i32
    %c0_i32_1 = arith.constant 0 : i32
    return %arg0, %c0_i32, %c0_i32_0 : i32, i32, i32
  }
  func.func @transform_2(%arg0: i32) -> (i32, i32) {
    %c0_i32 = arith.constant 0 : i32
    %c0_i32_0 = arith.constant 0 : i32
    %c0_i32_1 = arith.constant 0 : i32
    return %c0_i32, %c0_i32_0 : i32, i32
  }
  func.func @transform_3(%arg0: i32) -> (i32, i32) {
    %c0_i32 = arith.constant 0 : i32
    %c0_i32_0 = arith.constant 0 : i32
    %c0_i32_1 = arith.constant 0 : i32
    return %c0_i32, %c0_i32_0 : i32, i32
  }
  func.func @transform_4(%arg0: i32) -> (i32, i32) {
    %c0_i32 = arith.constant 0 : i32
    %c0_i32_0 = arith.constant 0 : i32
    %c0_i32_1 = arith.constant 0 : i32
    return %c0_i32, %c0_i32_0 : i32, i32
  }
  func.func @transform_5(%arg0: i32) -> (i32, i32) {
    %c0_i32 = arith.constant 0 : i32
    %c0_i32_0 = arith.constant 0 : i32
    %c0_i32_1 = arith.constant 0 : i32
    return %c0_i32, %c0_i32_0 : i32, i32
  }
  func.func @transform_6(%arg0: i32) -> (i32, i32) {
    %c0_i32 = arith.constant 0 : i32
    %c0_i32_0 = arith.constant 0 : i32
    %c0_i32_1 = arith.constant 0 : i32
    return %c0_i32, %c0_i32_0 : i32, i32
  }
  func.func @transform_7(%arg0: i32) -> (i32, i32, i32) {
    %c0_i32 = arith.constant 0 : i32
    %c0_i32_0 = arith.constant 0 : i32
    %c0_i32_1 = arith.constant 0 : i32
    return %arg0, %c0_i32, %c0_i32_0 : i32, i32, i32
  }
}

</mosaic_0001>

<bundles_post_ra>
// kernel: tpu_custom_call.1
= control target key start
LH: loop header
LB: loop body
LE: loop exit
PB: predicated region body
PF: predicated region fallthrough
CT: control target
= control target key end

     0   :  { %s1600_s0 = inlined_call_operand.hbm [shape: f32[2,8,32], index: 0, kind: input, shape index: {}]   ;;  %s1601_s1 = inlined_call_operand.hbm [shape: f32[2,8,8], index: 1, kind: input, shape index: {}]   ;;  %s1602_s2 = inlined_call_operand.hbm [shape: f32[8,8], index: 2, kind: input, shape index: {}]   ;;  %s1603_s3 = inlined_call_operand.hbm [shape: f32[32,32], index: 3, kind: input, shape index: {}]   ;;  %s1604_s4 = inlined_call_operand.vmem [shape: f32[1,32], index: 4, kind: input, shape index: {}]   ;;  %s1605_s5 = inlined_call_operand.hbm [shape: f32[32,128], index: 5, kind: input, shape index: {}]   ;;  %s1606_s6 = inlined_call_operand.vmem [shape: f32[1,128], index: 6, kind: input, shape index: {}]   ;;  %s1607_s7 = inlined_call_operand.hbm [shape: f32[2,8,128], index: 7, kind: output, shape index: {}]  }
   0x1   :  { %1612 = sst [smem:[#allocation18_spill]] %s1602_s2 }
   0x2   :  { %1613 = sst [smem:[#allocation19_spill]] %s1603_s3 }
   0x3   :  { %1614 = sst [smem:[#allocation20_spill]] %s1605_s5 }
   0x4   :  { %12 = vsyncpa [#allocation3], 0 }
   0x5   :  { %14 = vsyncpa [#allocation3 + $0x1], 0 }
   0x6   :  { %15 = vsyncpa [#allocation6], 0 }
   0x7   :  { %17 = vsyncpa [#allocation6 + $0x1], 0 }
   0x8   :  { %18 = vsyncpa [#allocation9], 0 }
   0x9   :  { %19 = vsyncpa [#allocation4], 0 }
   0xa   :  { %21 = vsyncpa [#allocation4 + $0x1], 0  ;;  %s1297_s24 = smov 0   ;;  %s1299_s25 = smov 0  }
   0xb   :  { %s1301_s26 = smov 0   ;;  %s1303_s27 = smov 0  }
   0xc LB: > { %s1318_s28 = sadd.s32 4294967295, %s1244_s27   ;;  %s848_s29 = sadd.s32 4294967294, %s1244_s27   ;;  %s1244_s27 = sphi %s1303_s27, %s1640_s27   ;;  %s1240_s26 = sphi %s1301_s26, %s1639_s26   ;;  %s1236_s25 = sphi %s1299_s25, %s1638_s25   ;;  %s1232_s24 = sphi %s1297_s24, %s1637_s24  }
   0xd   : > { %p47_p0 = scmp.ne.s32.totalorder %s1236_s25, %s1232_s24  ;;  %p1608_p1 = scmp.eq.s32.totalorder %s1318_s28, 0 }
   0xe   : > { %p208_p3 = scmp.eq.s32.totalorder %s848_s29, 1  ;;  %p849_p5 = scmp.ge.s32.totalorder %s1244_s27, 1 }
   0xf   : > { %p1327_p4 = por %p1608_p1, %p47_p0  ;;  %p215_p7 = scmp.lt.s32.totalorder %s1244_s27, 3 }
  0x10   : > { %p1332_p6 = por %p208_p3, %p47_p0  ;;  %s1246_s10 = smov [#allocation7]  }
  0x11   : > { %s1615_s30 = scalar_select %p1327_p4, 1, 0 }
  0x12   : > { %s1616_s8 = scalar_select %p1332_p6, 1, 0 }
  0x13   : > { %p1337_p8 = pnand %p849_p5, %p215_p7  ;;  %s228_s11 = sshll.u32 %s1246_s10, 4  ;;  %s229_s11 = int_to_ptr.vmem [resolvable:$true] %s228_s11 }
  0x14   : > { %s1247_s12 = smov [#allocation8]   ;;  %s1248_s15 = smov [#allocation10]  }
  0x15   : > { %s1617_s9 = scalar_select %p1337_p8, 1, 0 }
  0x16   : > { %p951_p10 = pneg %p1337_p8  ;;  %s238_s13 = sshll.u32 %s1247_s12, 4  ;;  %s1350_s13 = int_to_ptr.vmem [resolvable:$true] %s238_s13 }
  0x17   : > { %s1352_s16 = sshll.u32 %s1248_s15, 4  ;;  %s1619_s2 = sld [smem:[#allocation18_spill]]  ;;  %s255_s16 = int_to_ptr.vmem [resolvable:$true] %s1352_s16 }
  0x18   : > { %p1346_p11 = pnand %p951_p10, %p1608_p1 }
  0x1a   : > { %p1362_p13 = pneg %p1346_p11 }
  0x1d   : > { %s1022_s19 = scalar_lea.hbm %s1619_s2, 128 }
  0x1e   : > { %p1023_p12 = scmp.ne.s32.totalorder %s1619_s2, %s1022_s19  ;;  %p1029_p5 = scmp.lt.u32.totalorder %s1022_s19, %s1619_s2 }
  0x20   : > { %p1025_p0 = pnand %p1362_p13, %p1023_p12 }
  0x22   : > { %p1026_p3 = pneg %p1025_p0 }
  0x24   : > { %p1031_p7 = pnand %p1029_p5, %p1026_p3 }
  0x26   : > { %1034 = shalt.err (!%p1031_p7)
}
  0x27   : > { %s1035_s10 = scalar_lea.vmem %s229_s11, 128  ;;  %p1043_p2 = scmp.lt.s32.totalorder %s229_s11, %s229_s11 }
  0x28   : > { %p1036_p10 = scmp.ne.s32.totalorder %s229_s11, %s1035_s10  ;;  %p1044_p6 = scmp.lt.s32.totalorder %s1035_s10, %s1035_s10 }
  0x2a   : > { %p1038_p9 = pnand %p1036_p10, %p1362_p13  ;;  %p1045_p4 = por %p1044_p6, %p1043_p2 }
  0x2c   : > { %p1039_p1 = pneg %p1038_p9 }
  0x2e   : > { %p1046_p8 = pnand %p1045_p4, %p1039_p1 }
  0x30   : > { %1049 = shalt.err (!%p1046_p8)
}
  0x31   : > { %954 = dma.hbm_to_vmem [thread:$0]  (!%p1346_p11), %s1619_s2, 128, %s229_s11, [#allocation6]  }
  0x32   : > { %s1621_s3 = sld [smem:[#allocation19_spill]] }
  0x38   : > { %s1050_s19 = scalar_lea.hbm %s1621_s3, 512 }
  0x39   : > { %p1051_p9 = scmp.ne.s32.totalorder %s1621_s3, %s1050_s19  ;;  %p1057_p1 = scmp.lt.u32.totalorder %s1050_s19, %s1621_s3 }
  0x3b   : > { %p1053_p12 = pnand %p1051_p9, %p1362_p13 }
  0x3d   : > { %p1054_p2 = pneg %p1053_p12 }
  0x3f   : > { %p1059_p4 = pnand %p1057_p1, %p1054_p2 }
  0x41   : > { %1062 = shalt.err (!%p1059_p4)
}
  0x42   : > { %s1063_s11 = scalar_lea.vmem %s1350_s13, 512  ;;  %p1071_p3 = scmp.lt.s32.totalorder %s1350_s13, %s1350_s13 }
  0x43   : > { %p1064_p6 = scmp.ne.s32.totalorder %s1350_s13, %s1063_s11  ;;  %p1072_p5 = scmp.lt.s32.totalorder %s1063_s11, %s1063_s11 }
  0x45   : > { %p1066_p8 = pnand %p1064_p6, %p1362_p13  ;;  %p1073_p7 = por %p1072_p5, %p1071_p3 }
  0x47   : > { %p1067_p0 = pneg %p1066_p8 }
  0x49   : > { %p1074_p10 = pnand %p1073_p7, %p1067_p0 }
  0x4b   : > { %1077 = shalt.err (!%p1074_p10)
}
  0x4c   : > { %s1249_s10 = smov 128   ;;  %s1250_s12 = smov 8  }
  0x4d   : > { %957 = dma.hbm_to_vmem [thread:$0]  (!%p1346_p11), %s1621_s3, 512, %s1350_s13, [#allocation9], %s1249_s10, %s1249_s10, %s1250_s12  }
  0x4e   : > { %s1622_s5 = sld [smem:[#allocation20_spill]] }
  0x54   : > { %s1078_s20 = scalar_lea.hbm %s1622_s5, 512 }
  0x55   : > { %p1079_p9 = scmp.ne.s32.totalorder %s1622_s5, %s1078_s20  ;;  %p1085_p1 = scmp.lt.u32.totalorder %s1078_s20, %s1622_s5 }
  0x57   : > { %p1081_p12 = pnand %p1079_p9, %p1362_p13 }
  0x59   : > { %p1082_p2 = pneg %p1081_p12 }
  0x5b   : > { %p1087_p4 = pnand %p1085_p1, %p1082_p2 }
  0x5d   : > { %1090 = shalt.err (!%p1087_p4)
}
  0x5e   : > { %s1091_s15 = scalar_lea.vmem %s255_s16, 512  ;;  %p1099_p3 = scmp.lt.s32.totalorder %s255_s16, %s255_s16 }
  0x5f   : > { %p1092_p6 = scmp.ne.s32.totalorder %s255_s16, %s1091_s15  ;;  %p1100_p5 = scmp.lt.s32.totalorder %s1091_s15, %s1091_s15 }
  0x61   : > { %p1094_p8 = pnand %p1092_p6, %p1362_p13  ;;  %p1101_p7 = por %p1100_p5, %p1099_p3 }
  0x63   : > { %p1095_p0 = pneg %p1094_p8 }
  0x65   : > { %p1102_p10 = pnand %p1101_p7, %p1095_p0 }
  0x67   : > { %1105 = shalt.err (!%p1102_p10)
}
  0x68   : > { %960 = dma.hbm_to_vmem [thread:$0]  (!%p1346_p11), %s1622_s5, 512, %s255_s16, [#allocation9], %s1249_s10, %s1249_s10, %s1250_s12  }
  0x69   : > { %s1421_s22 = sadd.s32 1, %s1244_s27   ;;  %s34_s14 = sadd.s32 1, %s1240_s26 }
  0x6a   : > { %s31_s18 = ssub.s32 %s1244_s27, %s1421_s22  ;;  %p41_p9 = scmp.ne.s32.totalorder %s1240_s26, %s1236_s25 }
  0x6b   : > { %p32_p13 = scmp.eq.s32.totalorder %s31_s18, 0  ;;  %p42_p12 = scmp.eq.s32.totalorder %s1244_s27, 0 }
  0x6c   : > { %p975_p2 = scmp.lt.s32.totalorder %s1244_s27, 2  ;;  %p1624_p4 = scmp.eq.s32.totalorder %s1318_s28, 1 }
  0x6d   : > { %s1431_s19 = scalar_select %p32_p13, %s1240_s26, %s34_s14  }
  0x6e   : > { %p43_p1 = por %p42_p12, %p41_p9  ;;  %p1435_p6 = por %p1624_p4, %p41_p9 }
  0x6f   : > { %1623 = sst [smem:[#allocation17_spill]] %s1431_s19  ;;  %s271_s21 = sand.u32 1, %s1240_s26  }
  0x70   : > { %s1625_s20 = scalar_select %p1435_p6, 1, 0 }
  0x71   : > { %s855_s23 = sshll.u32 %s1244_s27, 7  ;;  %s1441_s16 = sshll.u32 %s271_s21, 3 }
  0x72   : > { %s1446_s29 = scalar_lea.hbm %s1600_s0, %s855_s23  ;;  %s275_s11 = scalar_lea.vmem [#allocation2], %s1441_s16 }
  0x73   : > { %s282_s15 = sshll.u32 %s275_s11, 4  ;;  %p1449_p11 = pnand %p975_p2, %p43_p1  ;;  %s1453_s15 = int_to_ptr.vmem [resolvable:$true] %s282_s15 }
  0x74   : > { %s1458_s14 = scalar_lea.hbm %s1601_s1, %s855_s23  ;;  %s272_s10 = scalar_lea.sflag [#allocation3], %s271_s21 }
  0x75   : > { %s1106_s12 = scalar_lea.hbm %s1446_s29, 128  ;;  %p1108_p0 = pneg %p1449_p11 }
  0x76   : > { %p1107_p8 = scmp.ne.s32.totalorder %s1446_s29, %s1106_s12  ;;  %s1111_s3 = scalar_lea.hbm %s1600_s0, 256 }
  0x77   : > { %p1112_p7 = scmp.lt.u32.totalorder %s1446_s29, %s1600_s0  ;;  %p1113_p10 = scmp.lt.u32.totalorder %s1111_s3, %s1106_s12 }
  0x78   : > { %p1109_p3 = pnand %p1108_p0, %p1107_p8  ;;  %p1115_p9 = scmp.lt.u32.totalorder %s1106_s12, %s1446_s29 }
  0x79   : > { %p1114_p13 = por %p1113_p10, %p1112_p7 }
  0x7a   : > { %p1110_p5 = pneg %p1109_p3 }
  0x7b   : > { %p1116_p12 = por %p1115_p9, %p1114_p13 }
  0x7d   : > { %p1117_p2 = pnand %p1116_p12, %p1110_p5 }
  0x7f   : > { %1120 = shalt.err (!%p1117_p2)
}
  0x80   : > { %s1121_s21 = scalar_lea.vmem %s1453_s15, 128  ;;  %s1251_s2 = smov [#allocation2]  }
  0x81   : > { %p1122_p1 = scmp.ne.s32.totalorder %s1453_s15, %s1121_s21  ;;  %s1126_s23 = sshll.u32 %s1251_s2, 4  ;;  %s1127_s23 = int_to_ptr.vmem [resolvable:$false] %s1126_s23 }
  0x82   : > { %s1128_s5 = scalar_lea.vmem %s1127_s23, 256  ;;  %p1129_p3 = scmp.lt.s32.totalorder %s1453_s15, %s1127_s23 }
  0x83   : > { %p1124_p4 = pnand %p1122_p1, %p1108_p0  ;;  %p1130_p7 = scmp.lt.s32.totalorder %s1128_s5, %s1121_s21 }
  0x85   : > { %p1125_p8 = pneg %p1124_p4  ;;  %p1131_p10 = por %p1130_p7, %p1129_p3 }
  0x87   : > { %p1132_p13 = pnand %p1131_p10, %p1125_p8 }
  0x89   : > { %1135 = shalt.err (!%p1132_p13)
}
  0x8a   : > { %964 = dma.hbm_to_vmem [thread:$0]  (!%p1449_p11), %s1446_s29, 128, %s1453_s15, %s272_s10  }
  0x8b   : > { %s289_s3 = sand.u32 1, %s1244_s27   ;;  %s293_s19 = scalar_lea.vmem [#allocation5], %s1441_s16 }
  0x8c   : > { %s300_s17 = sshll.u32 %s293_s19, 4  ;;  %s290_s18 = scalar_lea.sflag [#allocation6], %s289_s3  ;;  %s301_s17 = int_to_ptr.vmem [resolvable:$true] %s300_s17 }
  0x8d   : > { %s1136_s12 = scalar_lea.hbm %s1458_s14, 128  ;;  %s1141_s2 = scalar_lea.hbm %s1601_s1, 256 }
  0x8e   : > { %p1137_p5 = scmp.ne.s32.totalorder %s1458_s14, %s1136_s12  ;;  %p1142_p2 = scmp.lt.u32.totalorder %s1458_s14, %s1601_s1 }
  0x8f   : > { %p1143_p1 = scmp.lt.u32.totalorder %s1141_s2, %s1136_s12  ;;  %p1145_p8 = scmp.lt.u32.totalorder %s1136_s12, %s1458_s14 }
  0x90   : > { %p1139_p9 = pnand %p1137_p5, %p1108_p0 }
  0x91   : > { %p1144_p4 = por %p1143_p1, %p1142_p2 }
  0x92   : > { %p1140_p12 = pneg %p1139_p9 }
  0x93   : > { %p1146_p3 = por %p1145_p8, %p1144_p4 }
  0x95   : > { %p1147_p7 = pnand %p1146_p3, %p1140_p12 }
  0x97   : > { %1150 = shalt.err (!%p1147_p7)
}
  0x98   : > { %s1151_s16 = scalar_lea.vmem %s301_s17, 128  ;;  %s1252_s29 = smov [#allocation5]  }
  0x99   : > { %p1152_p10 = scmp.ne.s32.totalorder %s301_s17, %s1151_s16  ;;  %s1156_s15 = sshll.u32 %s1252_s29, 4  ;;  %s1157_s15 = int_to_ptr.vmem [resolvable:$false] %s1156_s15 }
  0x9a   : > { %s1158_s10 = scalar_lea.vmem %s1157_s15, 256  ;;  %p1159_p9 = scmp.lt.s32.totalorder %s301_s17, %s1157_s15 }
  0x9b   : > { %p1154_p13 = pnand %p1152_p10, %p1108_p0  ;;  %p1160_p6 = scmp.lt.s32.totalorder %s1158_s10, %s1151_s16 }
  0x9d   : > { %p1155_p5 = pneg %p1154_p13  ;;  %p1161_p1 = por %p1160_p6, %p1159_p9 }
  0x9f   : > { %p1162_p2 = pnand %p1161_p1, %p1155_p5 }
  0xa1   : > { %1165 = shalt.err (!%p1162_p2)
}
  0xa2   : > { %967 = dma.hbm_to_vmem [thread:$0]  (!%p1449_p11), %s1458_s14, 128, %s301_s17, %s290_s18  }
  0xa3   : > { %p1627_p12 = scmp.ne.s32.totalorder %s1617_s9, 0 }
  0xa4   : > { %s1509_s3 = sand.u32 (!%p1627_p12), 1, %s1236_s25   ;;  %p1628_p6 = scmp.ne.s32.totalorder (!%p1627_p12), %s1615_s30, 0 }
  0xa5   : > { %309 = sbr.rel (%p1627_p12) target bundleno = 1074 (0x432), region = 48  ;;  %s1512_s19 = sshll.u32 (!%p1627_p12), %s1509_s3, 3 }
  0xa6   : > { %s312_s12 = scalar_lea.sflag (!%p1627_p12), [#allocation3], %s1509_s3  ;;  %s315_s11 = scalar_lea.vmem (!%p1627_p12), [#allocation2], %s1512_s19 }
  0xac   : > { %1211 = dma.done.wait (%p1628_p6), %s312_s12, 128  }
  0xad   : > { %1213 = vsyncadd (%p1628_p6), %s312_s12, 4294967168  ;;  %s320_s9 = sand.u32 1, %s1318_s28   ;;  %s324_s14 = scalar_lea.vmem [#allocation5], %s1512_s19 }
  0xae   : > { %s321_s13 = scalar_lea.sflag [#allocation6], %s320_s9 }
  0xaf   : > { %1215 = dma.done.wait (%p1628_p6), %s321_s13, 128  }
  0xb0   : > { %1217 = vsyncadd (%p1628_p6), %s321_s13, 4294967168  ;;  %p1629_p11 = scmp.eq.s32.totalorder %s1318_s28, 0 }
  0xb2   : > { %1219 = dma.done.wait (%p1629_p11), [#allocation6], 128   ;;  %p1630_p0 = pmov %p1629_p11 }
  0xb4   : > { %1221 = vsyncadd (%p1630_p0), [#allocation6], 4294967168  ;;  %p1631_p4 = pmov %p1630_p0 }
  0xb5   : > { %p1632_p8 = pmov %p1630_p0 }
  0xb6   : > { %1223 = dma.done.wait (%p1631_p4), [#allocation9], 1024  }
  0xb7   : > { %1225 = vsyncadd (%p1632_p8), [#allocation9], 4294966272  ;;  %v1253_v0 = vmov 0.0   ;;  %vm1254_vm0 = vmmov 0   ;;  %vm385_vm1 = vcmask 64512   ;;  %v372_v1 = vld [vmem:[%s315_s11] sm:$0xff] }
  0xb8   : > { %889 = vmatprep.subr.mxu1 %v1253_v0  ;;  %891 = vmatprep.mubr.msk.f32.mxu1 %vm1254_vm0, %v1253_v0  ;;  %v374_v2 = vld [vmem:[#allocation7] sm:$0xff]  ;;  %v375_v3 = vld [vmem:[#allocation8] sm:$0xff]  ;;  %v376_v4 = vld [vmem:[#allocation8 + $0x8] sm:$0xff]  ;;  %v1255_v5 = vmov 0.0|0.0   ;;  %vm467_vm2 = vcmask 261120   ;;  %s872_s2 = sshll.u32 %s1318_s28, 7 }
  0xb9   : > { %905 = vmatprep.subr.mxu0 %v1253_v0  ;;  %907 = vmatprep.mubr.msk.f32.mxu0 %vm1254_vm0, %v1253_v0  ;;  %v922_v6 = vpack.c.bf16 %v376_v4, %v375_v3  ;;  %v377_v7 = vld [vmem:[#allocation8 + $0x10] sm:$0xff]  ;;  %v378_v8 = vld [vmem:[#allocation8 + $0x18] sm:$0xff]  ;;  %v380_v33 = vld [vmem:[#allocation10] sm:$0xff]  ;;  %s371_s23 = scalar_lea.vmem [#allocation11], %s1512_s19  ;;  %s1556_s15 = scalar_lea.hbm %s1607_s7, %s872_s2 }
  0xba   : > { %890 = vmatpush3.msra.mxu1 %v372_v1  ;;  %v925_v9 = vpack.c.bf16 %v378_v8, %v377_v7  ;;  %v373_v14 = vld [vmem:[%s324_s14] sm:$0xff]  ;;  %v866_v23 = vld [vmem:[%s1604_s4] ss:$0 sm:$0xff]  ;;  %s727_s5 = sshll.u32 %s371_s23, 4  ;;  %s714_s10 = scalar_lea.sflag [#allocation4], %s1509_s3  ;;  %s1558_s5 = int_to_ptr.vmem [resolvable:$true] %s727_s5 }
  0xbb   : > { %892 = vmatmul.mubr.msk.f32.vlgmr.msra.gmra.mrb[0].mxu1 %vm385_vm1, %v374_v2  ;;  %921 = vmatprep.subr.bf16.mxu1 %v1255_v5  ;;  %v544_v15 = vsel %vm385_vm1, %v373_v14, 0.0  ;;  %v381_v34 = vld [vmem:[#allocation10 + $0x8] sm:$0xff]  ;;  %v382_v36 = vld [vmem:[#allocation10 + $0x10] sm:$0xff]  ;;  %v383_v37 = vld [vmem:[#allocation10 + $0x18] sm:$0xff]  ;;  %s1166_s12 = scalar_lea.vmem %s1558_s5, 128  ;;  %p1633_p7 = scmp.ne.s32.totalorder %s1625_s20, 0 }
  0xbc   : > { %902 = vmatprep.mubr.msk.f32.mxu1 %vm1254_vm0, %v1253_v0  ;;  %923 = vmatpush3.bf16.msra.mxu1 %v922_v6  ;;  %v545_v16 = vrot.slane %v544_v15, 4  ;;  %v928_v35 = vpack.c.bf16 %v381_v34, %v380_v33  ;;  %v931_v38 = vpack.c.bf16 %v383_v37, %v382_v36  ;;  %v869_v45 = vld [vmem:[%s1606_s6] ss:$0 sm:$0xff]  ;;  %p1167_p3 = scmp.ne.s32.totalorder %s1558_s5, %s1166_s12  ;;  %s1256_s28 = smov [#allocation11]  }
  0xbd   : > { %924 = vmatprep.subr.bf16.mxu1 %v1255_v5  ;;  %s1170_s19 = sshll.u32 %s1256_s28, 4  ;;  %s1171_s19 = int_to_ptr.vmem [resolvable:$false] %s1170_s19 }
  0xbe   : > { %v546_v17 = vadd.f32 %v545_v16, %v544_v15  ;;  %p1168_p10 = pnand %p1167_p3, %p1633_p7  ;;  %s1172_s11 = scalar_lea.vmem %s1171_s19, 256 }
  0xbf   : > { %p1173_p5 = scmp.lt.s32.totalorder %s1558_s5, %s1171_s19  ;;  %p1174_p9 = scmp.lt.s32.totalorder %s1172_s11, %s1166_s12 }
  0xc0   : > { %926 = vmatpush3.bf16.msra.mxu1 %v925_v9  ;;  %v547_v18 = vrot.slane %v546_v17, 2  ;;  %p1169_p13 = pneg %p1168_p10 }
  0xc1   : > { %p1175_p1 = por %p1174_p9, %p1173_p5 }
  0xc2   : > { %v548_v19 = vadd.f32 %v547_v18, %v546_v17 }
  0xc3   : > { %p1176_p2 = pnand %p1175_p1, %p1169_p13 }
  0xc4   : > { %v549_v20 = vrot.slane %v548_v19, 1 }
  0xc6   : > { %v550_v21 = vadd.f32 %v549_v20, %v548_v19 }
  0xc8   : > { %v551_v22 = vadd.f32 1e-06, %v550_v21 }
  0xca   : > { %1020 = vrcp.f32 %v551_v22 }
  0xd4   : > { %v1021_v24 = vpop.eup %1020 }
  0xd5   : > { %v553_v28 = vmul.f32 0.5, %v1021_v24 }
  0xd7   : > { %v554_v31 = vmul.f32 %v553_v28, %v373_v14 }
 0x18e   : > { %v455_v10 = vpop.f32.mrb[0].mxu1 }
 0x18f   : > { %v459_v11 = vmul.f32 0.2, %v455_v10  ;;  %v893_v12 = vpop.f32.mrb[1].mxu1 }
 0x191   : > { %v460_v13 = vmax.f32 %v455_v10, %v459_v11 }
 0x193   : > { %903 = vmatmul.mubr.msk.f32.vlgmr.msra.gmra.mrb[2].mxu1 %vm467_vm2, %v460_v13 }
 0x266   : > { %v537_v25 = vpop.f32.mrb[2].mxu1 }
 0x267   : > { %v538_v26 = vadd.f32 %v866_v23, %v537_v25  ;;  %v904_v27 = vpop.f32.mrb[3].mxu1 }
 0x269   : > { %v541_v29 = vmul.f32 0.2, %v538_v26 }
 0x26b   : > { %v542_v30 = vmax.f32 %v538_v26, %v541_v29 }
 0x26d   : > { %v543_v32 = vadd.f32 %v542_v30, %v372_v1 }
 0x26f   : > { %906 = vmatpush3.msra.mxu0 %v543_v32  ;;  %v555_v39 = vmul.f32 0.8, %v543_v32 }
 0x270   : > { %908 = vmatmul.mubr.msk.f32.vlgmr.msra.gmra.mrb[0].mxu0 %vm385_vm1, %v554_v31  ;;  %927 = vmatprep.subr.bf16.mxu0 %v1255_v5 }
 0x271   : > { %918 = vmatprep.mubr.msk.f32.mxu0 %vm1254_vm0, %v1253_v0  ;;  %929 = vmatpush3.bf16.msra.mxu0 %v928_v35 }
 0x272   : > { %930 = vmatprep.subr.bf16.mxu0 %v1255_v5 }
 0x275   : > { %932 = vmatpush3.bf16.msra.mxu0 %v931_v38 }
 0x343   : > { %v625_v40 = vpop.f32.mrb[0].mxu0 }
 0x344   : > { %v626_v41 = vadd.f32 %v625_v40, %v555_v39  ;;  %v909_v42 = vpop.f32.mrb[1].mxu0 }
 0x346   : > { %v629_v43 = vmul.f32 0.2, %v626_v41 }
 0x348   : > { %v630_v44 = vmax.f32 %v626_v41, %v629_v43 }
 0x34a   : > { %919 = vmatmul.mubr.msk.f32.vlgmr.msra.gmra.mrb[2].mxu0 %vm467_vm2, %v630_v44 }
 0x41d   : > { %v706_v46 = vpop.f32.mrb[2].mxu0 }
 0x41e   : > { %v707_v47 = vadd.f32 %v869_v45, %v706_v46  ;;  %v920_v48 = vpop.f32.mrb[3].mxu0 }
 0x420   : > { %v710_v49 = vmul.f32 0.2, %v707_v47 }
 0x422   : > { %v711_v50 = vmax.f32 %v707_v47, %v710_v49 }
 0x424   : > { %712 = vst [vmem:[%s371_s23] sm:$0xff] %v711_v50 }
 0x425   : > { %1179 = shalt.err (!%p1176_p2)
}
 0x426   : > { %s1180_s3 = scalar_lea.hbm %s1556_s15, 128  ;;  %s1184_s14 = scalar_lea.hbm %s1607_s7, 256 }
 0x427   : > { %p1181_p12 = scmp.ne.s32.totalorder %s1556_s15, %s1180_s3  ;;  %p1185_p0 = scmp.lt.u32.totalorder %s1556_s15, %s1607_s7 }
 0x428   : > { %p1186_p4 = scmp.lt.u32.totalorder %s1184_s14, %s1180_s3  ;;  %p1188_p3 = scmp.lt.u32.totalorder %s1180_s3, %s1556_s15 }
 0x429   : > { %p1182_p6 = pnand %p1181_p12, %p1633_p7 }
 0x42a   : > { %p1187_p8 = por %p1186_p4, %p1185_p0 }
 0x42b   : > { %p1183_p11 = pneg %p1182_p6 }
 0x42c   : > { %p1189_p10 = por %p1188_p3, %p1187_p8 }
 0x42e   : > { %p1190_p13 = pnand %p1189_p10, %p1183_p11 }
 0x430   : > { %1193 = shalt.err (!%p1190_p13)
}
 0x431   : > { %949 = dma.vmem_to_hbm [thread:$0]  (%p1633_p7), %s1558_s5, 128, %s1556_s15, %s714_s10  }
 0x432 PF: > { %s739_s18 = sand.u32 1, %s1232_s24   ;;  %p1634_p5 = scmp.ne.s32.totalorder %s1616_s8, 0 }
 0x433   : > { %p1635_p9 = scmp.ge.s32.totalorder %s1244_s27, 2  ;;  %s740_s21 = scalar_lea.sflag [#allocation4], %s739_s18 }
 0x435   : > { %p969_p1 = pnand %p1635_p9, %p1634_p5 }
 0x437   : > { %1227 = dma.done.wait (!%p969_p1), %s740_s21, 128  }
 0x438   : > { %1229 = vsyncadd (!%p969_p1), %s740_s21, 4294967168  ;;  %s1636_s2 = sld [smem:[#allocation17_spill]]  ;;  %p24_p2 = scmp.ge.s32.totalorder %s1421_s22, 4  }
 0x439   : > { %s1637_s24 = smov %s1236_s25  ;;  %s1638_s25 = smov %s1240_s26 }
 0x43a   : > { %s1640_s27 = smov %s1421_s22  ;;  %26 = sbr.rel (!%p24_p2) target bundleno = 12 (0xc), region = 118 }
 0x43e   : > { %s1639_s26 = smov %s1636_s2 }
 0x441   :  { %745 = vsyncpa [#allocation3], 1 }
 0x442   :  { %747 = vsyncpa [#allocation3 + $0x1], 1 }
 0x443   :  { %748 = vsyncpa [#allocation6], 1 }
 0x444   :  { %750 = vsyncpa [#allocation6 + $0x1], 1 }
 0x445   :  { %751 = vsyncpa [#allocation9], 1 }
 0x446   :  { %752 = vsyncpa [#allocation4], 1 }
 0x447   :  { %754 = vsyncpa [#allocation4 + $0x1], 1 }

</bundles_post_ra>
